<compile_context>
chip_gen: v7x
topology: tpu7x:2x2x1
jax: 0.10.0
libtpu: 0.0.40
codegen_flags: <defaults>
</compile_context>

<pallas_src>
import functools

import jax
import jax.numpy as jnp
from jax.experimental import pallas as pl
from jax.experimental.pallas import tpu as pltpu


def _round_up(x, m):
    return ((x + m - 1) // m) * m


def _fused_mlp_kernel(x_ref, w_ref, b_ref, o_ref, *, row_offsets, row_sizes):
    """Single fused MLP.

    x_ref : [B, K0_pad]            bfloat16  (flattened, lane-padded input)
    w_ref : [sum(row_sizes), Npad] bfloat16  (all layers' [K_i, Npad] weights stacked on axis 0)
    b_ref : [L, Npad]              float32   (all biases, one row per layer)
    o_ref : [B, Npad]              float32   (final layer, lane-dense)

    row_offsets/row_sizes are static per-layer row windows into w_ref.  All intermediate
    activations stay in vregs; nothing round-trips through HBM.
    """
    num_layers = len(row_sizes)
    h = x_ref[...]  # bf16, MXU-native
    for i in range(num_layers):
        off, k = row_offsets[i], row_sizes[i]
        w = w_ref[off:off + k, :]                       # static slice, bf16 [k, Npad]
        acc = jnp.dot(h, w, preferred_element_type=jnp.float32)
        acc = acc + b_ref[i:i + 1, :]                   # f32 bias broadcast over rows
        if i < num_layers - 1:
            # Hidden layer: ReLU on the f32 accumulator (+ Dropout, identity in eval mode),
            # then down-cast once for the next MXU push.
            h = jnp.maximum(acc, 0.0).astype(jnp.bfloat16)
        else:
            o_ref[...] = acc.astype(o_ref.dtype)


def init_mlp_params(key, in_channel, n_hiddens, out_channel):
    """Deterministic parameter init matching nn.Linear shapes.

    PyTorch Linear stores weight as [out, in]; we keep [in, out] (pre-transposed)
    so the kernel does x @ w directly.
    """
    if isinstance(n_hiddens, int):
        n_hiddens = [n_hiddens]
    dims = [in_channel] + list(n_hiddens) + [out_channel]
    params = []
    for i in range(len(dims) - 1):
        fan_in, fan_out = dims[i], dims[i + 1]
        key, wk, bk = jax.random.split(key, 3)
        bound = 1.0 / (fan_in ** 0.5)  # same scheme as torch.nn.Linear default
        w = jax.random.uniform(wk, (fan_in, fan_out), jnp.float32, -bound, bound)
        b = jax.random.uniform(bk, (fan_out,), jnp.float32, -bound, bound)
        params.append((w, b))
    return params


def prepare_params(params):
    """One-time (hoisted) prep: pad to 128-lane widths, cast to bf16, pack into two slabs.

    Returns a dict with device arrays (packed weights/biases) and static metadata used to
    build the kernel.  Call once at init, not per forward.
    """
    num_layers = len(params)
    k0 = params[0][0].shape[0]
    k0_pad = _round_up(k0, 128)
    n_pad = max(_round_up(w.shape[1], 128) for w, _ in params)

    w_blocks, b_blocks, row_sizes = [], [], []
    for i, (w, b) in enumerate(params):
        k_in, n_out = w.shape
        k_tgt = k0_pad if i == 0 else n_pad
        w_blocks.append(jnp.pad(w, ((0, k_tgt - k_in), (0, n_pad - n_out))))
        b_blocks.append(jnp.pad(b, (0, n_pad - n_out)))
        row_sizes.append(k_tgt)

    row_offsets = []
    off = 0
    for k in row_sizes:
        row_offsets.append(off)
        off += k

    return {
        "w_packed": jnp.concatenate(w_blocks, axis=0).astype(jnp.bfloat16),
        "b_packed": jnp.stack(b_blocks, axis=0).astype(jnp.float32),
        "row_offsets": tuple(row_offsets),
        "row_sizes": tuple(row_sizes),
        "k0": k0,
        "k0_pad": k0_pad,
        "n_pad": n_pad,
        "out_channel": params[-1][0].shape[1],
    }


@functools.partial(
    jax.jit,
    static_argnames=("row_offsets", "row_sizes", "k0", "k0_pad", "n_pad", "out_channel"),
)
def _mlp_forward_impl(x, w_packed, b_packed, *, row_offsets, row_sizes,
                      k0, k0_pad, n_pad, out_channel):
    B = x.shape[0]
    h = x.reshape(B, -1).astype(jnp.bfloat16)           # flatten + bf16 cast in the wrapper
    if k0_pad != k0:
        h = jnp.pad(h, ((0, 0), (0, k0_pad - k0)))      # no-op at the example shapes

    kernel = functools.partial(_fused_mlp_kernel,
                               row_offsets=row_offsets, row_sizes=row_sizes)
    vmem_spec = pl.BlockSpec(memory_space=pltpu.MemorySpace.VMEM)

    out = pl.pallas_call(
        kernel,
        out_shape=jax.ShapeDtypeStruct((B, n_pad), jnp.float32),
        in_specs=[vmem_spec, vmem_spec, vmem_spec],
        out_specs=vmem_spec,
    )(h, w_packed, b_packed)
    return out[:, :out_channel]


def mlp_forward(x, prepared):
    """x: [B, C, H, W] (NCHW). `prepared` = prepare_params(params). Returns [B, out_channel] f32."""
    return _mlp_forward_impl(
        x, prepared["w_packed"], prepared["b_packed"],
        row_offsets=prepared["row_offsets"], row_sizes=prepared["row_sizes"],
        k0=prepared["k0"], k0_pad=prepared["k0_pad"],
        n_pad=prepared["n_pad"], out_channel=prepared["out_channel"],
    )


def mlp_reference(x, params):
    """Pure-JAX reference mirroring the kernel math (bf16 matmul inputs, f32 accumulate)."""
    B = x.shape[0]
    h = x.reshape(B, -1).astype(jnp.float32)
    num_layers = len(params)
    for i, (w, b) in enumerate(params):
        acc = jnp.dot(h.astype(jnp.bfloat16), w.astype(jnp.bfloat16),
                      preferred_element_type=jnp.float32) + b
        if i < num_layers - 1:
            h = jnp.maximum(acc, 0.0)
        else:
            return acc


if __name__ == "__main__":
    key = jax.random.PRNGKey(0)
    kx, kp = jax.random.split(key)

    B, C, H, W = 2, 4, 16, 16
    in_channel = C * H * W          # flattened feature size = 1024
    n_hiddens = [32, 32]
    out_channel = 8

    x = jax.random.normal(kx, (B, C, H, W), jnp.float32)
    params = init_mlp_params(kp, in_channel, n_hiddens, out_channel)
    prepared = prepare_params(params)   # hoisted: cast/pad/pack done once, not per forward

    out = jax.block_until_ready(mlp_forward(x, prepared))
    ref = mlp_reference(x, params)

    assert out.shape == (B, out_channel)
    assert jnp.allclose(out, ref, atol=1e-3, rtol=1e-3), "mismatch vs reference"

    print("KERNEL_OK")
</pallas_src>

<mosaic_0001>
module attributes {stable_mosaic.version = 11 : i64} {
  func.func @_fused_mlp_kernel(%arg0: memref<2x1024xbf16, #tpu.memory_space<vmem>>, %arg1: memref<1280x128xbf16, #tpu.memory_space<vmem>>, %arg2: memref<3x128xf32, #tpu.memory_space<vmem>>, %arg3: memref<2x128xf32, #tpu.memory_space<vmem>>) attributes {dimension_semantics = [], scalar_prefetch = 0 : i64, scratch_operands = 0 : i64, tpu.core_type = #tpu.core_type<tc>} {
    %c0 = arith.constant 0 : index
    %c0_0 = arith.constant 0 : index
    %0 = vector.load %arg0[%c0, %c0_0] : memref<2x1024xbf16, #tpu.memory_space<vmem>>, vector<2x1024xbf16>
    %c0_1 = arith.constant 0 : index
    %c0_2 = arith.constant 0 : index
    %1 = vector.load %arg1[%c0_1, %c0_2] : memref<1280x128xbf16, #tpu.memory_space<vmem>>, vector<1024x128xbf16>
    %cst = arith.constant dense<0.000000e+00> : vector<2x128xf32>
    %2 = tpu.matmul %0, %1, %cst {dimension_numbers = #tpu.dot_dimension_numbers<[1], [0], [0], [1], [0, 0, 1, 1], [], []>} : vector<2x1024xbf16>, vector<1024x128xbf16>, vector<2x128xf32> -> vector<2x128xf32>
    %c0_3 = arith.constant 0 : index
    %c0_4 = arith.constant 0 : index
    %3 = vector.load %arg2[%c0_3, %c0_4] : memref<3x128xf32, #tpu.memory_space<vmem>>, vector<1x128xf32>
    %4 = vector.broadcast %3 : vector<1x128xf32> to vector<2x128xf32>
    %5 = arith.addf %2, %4 : vector<2x128xf32>
    %cst_5 = arith.constant 0.000000e+00 : f32
    %6 = vector.broadcast %cst_5 : f32 to vector<2x128xf32>
    %7 = arith.maximumf %5, %6 : vector<2x128xf32>
    %8 = arith.truncf %7 : vector<2x128xf32> to vector<2x128xbf16>
    %c1024 = arith.constant 1024 : index
    %c0_6 = arith.constant 0 : index
    %9 = vector.load %arg1[%c1024, %c0_6] : memref<1280x128xbf16, #tpu.memory_space<vmem>>, vector<128x128xbf16>
    %cst_7 = arith.constant dense<0.000000e+00> : vector<2x128xf32>
    %10 = tpu.matmul %8, %9, %cst_7 {dimension_numbers = #tpu.dot_dimension_numbers<[1], [0], [0], [1], [0, 0, 1, 1], [], []>} : vector<2x128xbf16>, vector<128x128xbf16>, vector<2x128xf32> -> vector<2x128xf32>
    %c1 = arith.constant 1 : index
    %c0_8 = arith.constant 0 : index
    %11 = vector.load %arg2[%c1, %c0_8] : memref<3x128xf32, #tpu.memory_space<vmem>>, vector<1x128xf32>
    %12 = vector.broadcast %11 : vector<1x128xf32> to vector<2x128xf32>
    %13 = arith.addf %10, %12 : vector<2x128xf32>
    %cst_9 = arith.constant 0.000000e+00 : f32
    %14 = vector.broadcast %cst_9 : f32 to vector<2x128xf32>
    %15 = arith.maximumf %13, %14 : vector<2x128xf32>
    %16 = arith.truncf %15 : vector<2x128xf32> to vector<2x128xbf16>
    %c1152 = arith.constant 1152 : index
    %c0_10 = arith.constant 0 : index
    %17 = vector.load %arg1[%c1152, %c0_10] : memref<1280x128xbf16, #tpu.memory_space<vmem>>, vector<128x128xbf16>
    %cst_11 = arith.constant dense<0.000000e+00> : vector<2x128xf32>
    %18 = tpu.matmul %16, %17, %cst_11 {dimension_numbers = #tpu.dot_dimension_numbers<[1], [0], [0], [1], [0, 0, 1, 1], [], []>} : vector<2x128xbf16>, vector<128x128xbf16>, vector<2x128xf32> -> vector<2x128xf32>
    %c2 = arith.constant 2 : index
    %c0_12 = arith.constant 0 : index
    %19 = vector.load %arg2[%c2, %c0_12] : memref<3x128xf32, #tpu.memory_space<vmem>>, vector<1x128xf32>
    %20 = vector.broadcast %19 : vector<1x128xf32> to vector<2x128xf32>
    %21 = arith.addf %18, %20 : vector<2x128xf32>
    %c0_13 = arith.constant 0 : index
    %c0_14 = arith.constant 0 : index
    %22 = vector.load %arg3[%c0_13, %c0_14] : memref<2x128xf32, #tpu.memory_space<vmem>>, vector<2x128xf32>
    tpu.vector_store %arg3[%c0_13, %c0_14], %21 {strides = array<i32>} : memref<2x128xf32, #tpu.memory_space<vmem>>, vector<2x128xf32>,
    return
  }
}

</mosaic_0001>

<bundles_post_ra>
// kernel: _mlp_forward_impl.1
= control target key start
LH: loop header
LB: loop body
LE: loop exit
PB: predicated region body
PF: predicated region fallthrough
CT: control target
= control target key end

     0   :  { %8 = vsyncpa [#allocation3], 0  ;;  %s1463_s0 = inlined_call_operand.vmem [shape: bf16[2,1024], index: 0, kind: input, shape index: {}]   ;;  %s1464_s1 = inlined_call_operand.hbm [shape: bf16[1280,128], index: 1, kind: input, shape index: {}]   ;;  %s1465_s2 = inlined_call_operand.vmem [shape: f32[3,128], index: 2, kind: input, shape index: {}]   ;;  %s1466_s3 = inlined_call_operand.hbm [shape: f32[2,128], index: 3, kind: output, shape index: {}]  }
   0x1   :  { %9 = vsyncpa [#allocation4], 0  ;;  %s1369_s12 = smov [#allocation2]   ;;  %s1321_s16 = scalar_lea.hbm %s1464_s1, 10240 }
   0x2   :  { %s17_s13 = sshll.u32 %s1369_s12, 4  ;;  %p1322_p0 = scmp.ne.s32.totalorder %s1464_s1, %s1321_s16  ;;  %s18_s13 = int_to_ptr.vmem [resolvable:$true] %s17_s13 }
   0x3   :  { %p1325_p1 = scmp.lt.u32.totalorder %s1321_s16, %s1464_s1 }
   0x5   :  { %p1327_p2 = pnand %p1325_p1, %p1322_p0 }
   0x7   :  { %1330 = shalt.err (!%p1327_p2)
}
   0x8   :  { %s1331_s21 = scalar_lea.vmem %s18_s13, 10240  ;;  %p1336_p4 = scmp.lt.s32.totalorder %s18_s13, %s18_s13 }
   0x9   :  { %p1332_p3 = scmp.ne.s32.totalorder %s18_s13, %s1331_s21  ;;  %p1337_p5 = scmp.lt.s32.totalorder %s1331_s21, %s1331_s21 }
   0xb   :  { %p1338_p6 = por %p1337_p5, %p1336_p4 }
   0xd   :  { %p1339_p7 = pnand %p1338_p6, %p1332_p3 }
   0xf   :  { %1342 = shalt.err (!%p1339_p7)
}
  0x10   :  { %s1370_s22 = smov 64   ;;  %s1371_s23 = smov 4  }
  0x11   :  { %23 = dma.hbm_to_vmem [thread:$0]  %s1464_s1, 10240, %s18_s13, [#allocation3], %s1370_s22, %s1370_s22, %s1371_s23  }
  0x12   :  { %1365 = dma.done.wait [#allocation3], 10240  }
  0x13   :  { %1366 = vsyncadd [#allocation3], 4294957056  ;;  %v1240_v0 = vld [vmem:[#allocation2 + $0x40] sm:$0xff]   ;;  %v1244_v4 = vld [vmem:[#allocation2 + $0x48] sm:$0xff]   ;;  %v1372_v22 = vmov 1966171168   ;;  %v169_v24 = vlaneseq }
  0x14   :  { %v1241_v1 = vld [vmem:[#allocation2 + $0xc0] sm:$0xff]   ;;  %1087 = vmatprep.subr.bf16.mxu0 %v1240_v0  ;;  %v1245_v5 = vld [vmem:[#allocation2 + $0xc8] sm:$0xff]   ;;  %v1248_v8 = vld [vmem:[#allocation2 + $0x50] sm:$0xff]   ;;  %v167_v23 = vunpack.c.l.s4 %v1372_v22  ;;  %vm1374_vm0 = vmmov 0   ;;  %s1375_s5 = smov [#allocation5]  }
  0x15   :  { %v1242_v2 = vld [vmem:[#allocation2] sm:$0xff]   ;;  %1109 = vmatprep.subr.bf16.mxu1 %v1241_v1  ;;  %v1246_v6 = vld [vmem:[#allocation2 + $0x8] sm:$0xff]   ;;  %v1249_v9 = vld [vmem:[#allocation2 + $0xd0] sm:$0xff]   ;;  %v170_v30 = vshrl.u32 %v169_v24, 7  ;;  %s995_s6 = sshll.u32 %s1375_s5, 4  ;;  %s996_s6 = int_to_ptr.vmem [resolvable:$true] %s995_s6 }
  0x16   :  { %v1243_v3 = vld [vmem:[#allocation2 + $0x80] sm:$0xff]   ;;  %1088 = vmatpush3.bf16.msra.mxu0 %v1242_v2  ;;  %v1247_v7 = vld [vmem:[#allocation2 + $0x88] sm:$0xff]   ;;  %v1250_v10 = vld [vmem:[#allocation2 + $0x10] sm:$0xff]   ;;  %v168_v29 = vunpack.c.0.s8 %v167_v23  ;;  %s1343_s7 = scalar_lea.vmem %s996_s6, 32  ;;  %p1348_p9 = scmp.lt.s32.totalorder %s996_s6, %s996_s6 }
  0x17   :  { %1110 = vmatpush3.bf16.msra.mxu1 %v1243_v3  ;;  %1089 = vmatprep.subr.bf16.mxu0 %v1244_v4  ;;  %v1251_v11 = vld [vmem:[#allocation2 + $0x90] sm:$0xff]   ;;  %v1252_v12 = vld [vmem:[#allocation2 + $0x58] sm:$0xff]   ;;  %v1256_v16 = vld [vmem:[#allocation2 + $0x60] sm:$0xff]   ;;  %p1344_p8 = scmp.ne.s32.totalorder %s996_s6, %s1343_s7  ;;  %p1349_p10 = scmp.lt.s32.totalorder %s1343_s7, %s1343_s7 }
  0x18   :  { %1111 = vmatprep.subr.bf16.mxu1 %v1245_v5  ;;  %v1253_v13 = vld [vmem:[#allocation2 + $0xd8] sm:$0xff]   ;;  %v1257_v17 = vld [vmem:[#allocation2 + $0xe0] sm:$0xff]   ;;  %v1260_v20 = vld [vmem:[#allocation2 + $0x68] sm:$0xff]   ;;  %v1408_v35 = vsub.s32 %v168_v29, %v170_v30 }
  0x19   :  { %v1254_v14 = vld [vmem:[#allocation2 + $0x18] sm:$0xff]   ;;  %v1258_v18 = vld [vmem:[#allocation2 + $0x20] sm:$0xff]   ;;  %v1261_v21 = vld [vmem:[#allocation2 + $0xe8] sm:$0xff]   ;;  %p1350_p11 = por %p1349_p10, %p1348_p9 }
  0x1a   :  { %1090 = vmatpush3.bf16.msra.mxu0 %v1246_v6  ;;  %v1255_v15 = vld [vmem:[#allocation2 + $0x98] sm:$0xff]   ;;  %v1259_v19 = vld [vmem:[#allocation2 + $0xa0] sm:$0xff]   ;;  %v1262_v25 = vld [vmem:[#allocation2 + $0x28] sm:$0xff]  }
  0x1b   :  { %1112 = vmatpush3.bf16.msra.mxu1 %v1247_v7  ;;  %1091 = vmatprep.subr.bf16.mxu0 %v1248_v8  ;;  %v1263_v26 = vld [vmem:[#allocation2 + $0xa8] sm:$0xff]   ;;  %v1264_v27 = vld [vmem:[#allocation2 + $0x70] sm:$0xff]   ;;  %v1268_v33 = vld [vmem:[#allocation2 + $0x78] sm:$0xff]   ;;  %p1351_p12 = pnand %p1350_p11, %p1344_p8 }
  0x1c   :  { %1113 = vmatprep.subr.bf16.mxu1 %v1249_v9  ;;  %v1265_v28 = vld [vmem:[#allocation2 + $0xf0] sm:$0xff]   ;;  %v1269_v34 = vld [vmem:[#allocation2 + $0xf8] sm:$0xff]   ;;  %v30_v38 = vld [vmem:[%s1463_s0] sm:$0xff] }
  0x1d   :  { %v1266_v31 = vld [vmem:[#allocation2 + $0x30] sm:$0xff]   ;;  %v1270_v36 = vld [vmem:[#allocation2 + $0x38] sm:$0xff]   ;;  %v165_v39 = vcombine.high %v30_v38, %v30_v38  ;;  %v172_v40 = vrot.slane %v30_v38, %v1408_v35  ;;  %v1273_v41 = vld [vmem:[#allocation2 + $0x140] sm:$0xff]  }
  0x1e   :  { %1092 = vmatpush3.bf16.msra.mxu0 %v1250_v10  ;;  %v1267_v32 = vld [vmem:[#allocation2 + $0xb0] sm:$0xff]   ;;  %v1271_v37 = vld [vmem:[#allocation2 + $0xb8] sm:$0xff]   ;;  %v1274_v42 = vld [vmem:[#allocation2 + $0x1c0] sm:$0xff]  }
  0x1f   :  { %1114 = vmatpush3.bf16.msra.mxu1 %v1251_v11  ;;  %1093 = vmatprep.subr.bf16.mxu0 %v1252_v12  ;;  %v180_v43 = vcombine.high %v172_v40, %v172_v40  ;;  %v188_v44 = vrot.slane %v172_v40, %v1408_v35  ;;  %v1416_v45 = vrot.slane %v165_v39, %v1408_v35  ;;  %v1275_v46 = vld [vmem:[#allocation2 + $0x100] sm:$0xff]   ;;  %v1277_v51 = vld [vmem:[#allocation2 + $0x148] sm:$0xff]   ;;  %v1281_v58 = vld [vmem:[#allocation2 + $0x150] sm:$0xff]  }
  0x20   :  { %1115 = vmatprep.subr.bf16.mxu1 %v1253_v13  ;;  %v1276_v48 = vld [vmem:[#allocation2 + $0x180] sm:$0xff]   ;;  %v1278_v53 = vld [vmem:[#allocation2 + $0x1c8] sm:$0xff]   ;;  %v1282_v59 = vld [vmem:[#allocation2 + $0x1d0] sm:$0xff]  }
  0x21   :  { %v202_v47 = vrot.slane %v180_v43, %v1408_v35  ;;  %v181_v49 = vcombine.high %v1416_v45, %v1416_v45  ;;  %v210_v50 = vcombine.high %v188_v44, %v188_v44  ;;  %v1279_v55 = vld [vmem:[#allocation2 + $0x108] sm:$0xff]   ;;  %v1283_v60 = vld [vmem:[#allocation2 + $0x110] sm:$0xff]   ;;  %v1285_v62 = vld [vmem:[#allocation2 + $0x158] sm:$0xff]  }
  0x22   :  { %1094 = vmatpush3.bf16.msra.mxu0 %v1254_v14  ;;  %v1280_v56 = vld [vmem:[#allocation2 + $0x188] sm:$0xff]   ;;  %v1284_v61 = vld [vmem:[#allocation2 + $0x190] sm:$0xff]   ;;  %v1286_v63 = vld [vmem:[#allocation2 + $0x1d8] sm:$0xff]  }
  0x23   :  { %1116 = vmatpush3.bf16.msra.mxu1 %v1255_v15  ;;  %1095 = vmatprep.subr.bf16.mxu0 %v1256_v16  ;;  %v212_v52 = vcombine.high %v202_v47, %v202_v47  ;;  %v209_v54 = vrot.slane %v181_v49, %v1408_v35  ;;  %v1287_v0 = vld [vmem:[#allocation2 + $0x118] sm:$0xff]   ;;  %v1289_v2 = vld [vmem:[#allocation2 + $0x160] sm:$0xff]   ;;  %v1293_v6 = vld [vmem:[#allocation2 + $0x168] sm:$0xff]  }
  0x24   :  { %1117 = vmatprep.subr.bf16.mxu1 %v1257_v17  ;;  %638 = vmatprep.mubr.bf16.mxu0 %v202_v47  ;;  %v1288_v1 = vld [vmem:[#allocation2 + $0x198] sm:$0xff]   ;;  %v1290_v3 = vld [vmem:[#allocation2 + $0x1e0] sm:$0xff]   ;;  %v1294_v7 = vld [vmem:[#allocation2 + $0x1e8] sm:$0xff]  }
  0x25   :  { %678 = vmatprep.mubr.bf16.mxu1 %v212_v52  ;;  %v213_v57 = vcombine.high %v209_v54, %v209_v54  ;;  %v1291_v4 = vld [vmem:[#allocation2 + $0x120] sm:$0xff]   ;;  %v1295_v8 = vld [vmem:[#allocation2 + $0x128] sm:$0xff]   ;;  %v1297_v10 = vld [vmem:[#allocation2 + $0x170] sm:$0xff]  }
  0x26   :  { %1096 = vmatpush3.bf16.msra.mxu0 %v1258_v18  ;;  %v1292_v5 = vld [vmem:[#allocation2 + $0x1a0] sm:$0xff]   ;;  %v1296_v9 = vld [vmem:[#allocation2 + $0x1a8] sm:$0xff]   ;;  %v1298_v11 = vld [vmem:[#allocation2 + $0x1f0] sm:$0xff]   ;;  %v195_v18 = vrot.slane %v1416_v45, %v1408_v35 }
  0x27   :  { %1118 = vmatpush3.bf16.msra.mxu1 %v1259_v19  ;;  %1097 = vmatprep.subr.bf16.mxu0 %v1260_v20  ;;  %v1299_v12 = vld [vmem:[#allocation2 + $0x130] sm:$0xff]   ;;  %v1301_v14 = vld [vmem:[#allocation2 + $0x178] sm:$0xff]   ;;  %v1305_v20 = vld [vmem:[#allocation2 + $0x200] sm:$0xff]  }
  0x28   :  { %1119 = vmatprep.subr.bf16.mxu1 %v1261_v21  ;;  %v1300_v13 = vld [vmem:[#allocation2 + $0x1b0] sm:$0xff]   ;;  %v1302_v15 = vld [vmem:[#allocation2 + $0x1f8] sm:$0xff]   ;;  %v211_v19 = vcombine.high %v195_v18, %v195_v18  ;;  %v1373_v21 = vmov 0.0   ;;  %v1306_v22 = vld [vmem:[#allocation2 + $0x208] sm:$0xff]  }
  0x29   :  { %v1303_v16 = vld [vmem:[#allocation2 + $0x138] sm:$0xff]   ;;  %v1307_v23 = vld [vmem:[#allocation2 + $0x210] sm:$0xff]   ;;  %v1313_v29 = vld [vmem:[#allocation2 + $0x240] sm:$0xff]  }
  0x2a   :  { %1098 = vmatpush3.bf16.msra.mxu0 %v1262_v25  ;;  %v1304_v17 = vld [vmem:[#allocation2 + $0x1b8] sm:$0xff]   ;;  %v1309_v25 = vld [vmem:[#allocation2 + $0x220] sm:$0xff]   ;;  %v1314_v30 = vld [vmem:[#allocation2 + $0x248] sm:$0xff]  }
  0x2b   :  { %1120 = vmatpush3.bf16.msra.mxu1 %v1263_v26  ;;  %1099 = vmatprep.subr.bf16.mxu0 %v1264_v27  ;;  %v1308_v24 = vld [vmem:[#allocation2 + $0x218] sm:$0xff]   ;;  %v1310_v26 = vld [vmem:[#allocation2 + $0x228] sm:$0xff]   ;;  %v1311_v27 = vld [vmem:[#allocation2 + $0x230] sm:$0xff]  }
  0x2c   :  { %1121 = vmatprep.subr.bf16.mxu1 %v1265_v28  ;;  %v1312_v28 = vld [vmem:[#allocation2 + $0x238] sm:$0xff]  }
  0x2e   :  { %1100 = vmatpush3.bf16.msra.mxu0 %v1266_v31  ;;  %v1315_v31 = vld [vmem:[#allocation2 + $0x250] sm:$0xff]  }
  0x2f   :  { %1122 = vmatpush3.bf16.msra.mxu1 %v1267_v32  ;;  %1101 = vmatprep.subr.bf16.mxu0 %v1268_v33  ;;  %v1316_v32 = vld [vmem:[#allocation2 + $0x258] sm:$0xff]   ;;  %v1317_v33 = vld [vmem:[#allocation2 + $0x260] sm:$0xff]  }
  0x30   :  { %1123 = vmatprep.subr.bf16.mxu1 %v1269_v34  ;;  %v1318_v34 = vld [vmem:[#allocation2 + $0x268] sm:$0xff]  }
  0x32   :  { %1102 = vmatpush3.bf16.msra.mxu0 %v1270_v36  ;;  %v1004_v36 = vld [vmem:[%s1465_s2] ss:$0 sm:$0xff] }
  0x33   :  { %1124 = vmatpush3.bf16.msra.mxu1 %v1271_v37  ;;  %1131 = vmatprep.subr.bf16.mxu0 %v1273_v41 }
  0x34   :  { %1153 = vmatprep.subr.bf16.mxu1 %v1274_v42 }
  0x35   :  { %639 = vmatmul.mubr.bf16.vlgmr.msra.gmra.mrb[0].mxu0 %v188_v44 }
  0x36   :  { %1132 = vmatpush3.bf16.msra.mxu0 %v1275_v46  ;;  %679 = vmatmul.mubr.bf16.vlgmr.msra.gmra.mrb[0].mxu1 %v210_v50 }
  0x37   :  { %1133 = vmatprep.subr.bf16.mxu0 %v1277_v51  ;;  %1154 = vmatpush3.bf16.msra.mxu1 %v1276_v48 }
  0x38   :  { %718 = vmatprep.mubr.bf16.mxu0 %v209_v54  ;;  %1155 = vmatprep.subr.bf16.mxu1 %v1278_v53 }
  0x39   :  { %758 = vmatprep.mubr.bf16.mxu1 %v213_v57 }
  0x3a   :  { %1134 = vmatpush3.bf16.msra.mxu0 %v1279_v55 }
  0x3b   :  { %1135 = vmatprep.subr.bf16.mxu0 %v1281_v58  ;;  %1156 = vmatpush3.bf16.msra.mxu1 %v1280_v56 }
  0x3c   :  { %1157 = vmatprep.subr.bf16.mxu1 %v1282_v59 }
  0x3e   :  { %1136 = vmatpush3.bf16.msra.mxu0 %v1283_v60 }
  0x3f   :  { %1137 = vmatprep.subr.bf16.mxu0 %v1285_v62  ;;  %1158 = vmatpush3.bf16.msra.mxu1 %v1284_v61  ;;  %v1319_v62 = vld [vmem:[#allocation2 + $0x270] sm:$0xff]  }
  0x40   :  { %1159 = vmatprep.subr.bf16.mxu1 %v1286_v63  ;;  %v1320_v63 = vld [vmem:[#allocation2 + $0x278] sm:$0xff]  }
  0x42   :  { %1138 = vmatpush3.bf16.msra.mxu0 %v1287_v0  ;;  %v1069_v0 = vld [vmem:[%s1465_s2 + $0x1] ss:$0 sm:$0xff] }
  0x43   :  { %1139 = vmatprep.subr.bf16.mxu0 %v1289_v2  ;;  %1160 = vmatpush3.bf16.msra.mxu1 %v1288_v1 }
  0x44   :  { %1161 = vmatprep.subr.bf16.mxu1 %v1290_v3 }
  0x46   :  { %1140 = vmatpush3.bf16.msra.mxu0 %v1291_v4 }
  0x47   :  { %1141 = vmatprep.subr.bf16.mxu0 %v1293_v6  ;;  %1162 = vmatpush3.bf16.msra.mxu1 %v1292_v5 }
  0x48   :  { %1163 = vmatprep.subr.bf16.mxu1 %v1294_v7 }
  0x4a   :  { %1142 = vmatpush3.bf16.msra.mxu0 %v1295_v8  ;;  %v1078_v8 = vld [vmem:[%s1465_s2 + $0x2] ss:$0 sm:$0xff] }
  0x4b   :  { %1143 = vmatprep.subr.bf16.mxu0 %v1297_v10  ;;  %1164 = vmatpush3.bf16.msra.mxu1 %v1296_v9 }
  0x4c   :  { %1165 = vmatprep.subr.bf16.mxu1 %v1298_v11 }
  0x4e   :  { %1144 = vmatpush3.bf16.msra.mxu0 %v1299_v12 }
  0x4f   :  { %1145 = vmatprep.subr.bf16.mxu0 %v1301_v14  ;;  %1166 = vmatpush3.bf16.msra.mxu1 %v1300_v13 }
  0x50   :  { %1167 = vmatprep.subr.bf16.mxu1 %v1302_v15 }
  0x52   :  { %1146 = vmatpush3.bf16.msra.mxu0 %v1303_v16 }
  0x53   :  { %1168 = vmatpush3.bf16.msra.mxu1 %v1304_v17  ;;  %1193 = vmatprep.subr.bf16.mxu0 %v1373_v21 }
  0x54   :  { %1213 = vmatprep.subr.bf16.mxu1 %v1373_v21 }
  0x55   :  { %719 = vmatmul.mubr.bf16.vlgmr.msra.gmra.mrb[4].mxu0 %v195_v18 }
  0x56   :  { %759 = vmatmul.mubr.bf16.vlgmr.msra.gmra.mrb[4].mxu1 %v211_v19  ;;  %1194 = vmatpush3.bf16.msra.mxu0 %v1305_v20 }
  0x57   :  { %1195 = vmatprep.subr.bf16.mxu0 %v1373_v21  ;;  %1209 = vmatprep.mubr.msk.bf16.mxu0 %vm1374_vm0, %v1373_v21 }
  0x58   :  { %1229 = vmatprep.mubr.msk.bf16.mxu1 %vm1374_vm0, %v1373_v21  ;;  %1214 = vmatpush3.bf16.msra.mxu1 %v1313_v29 }
  0x59   :  { %1215 = vmatprep.subr.bf16.mxu1 %v1373_v21 }
  0x5a   :  { %1196 = vmatpush3.bf16.msra.mxu0 %v1306_v22 }
  0x5b   :  { %1197 = vmatprep.subr.bf16.mxu0 %v1373_v21 }
  0x5c   :  { %1216 = vmatpush3.bf16.msra.mxu1 %v1314_v30 }
  0x5d   :  { %1217 = vmatprep.subr.bf16.mxu1 %v1373_v21 }
  0x5e   :  { %1198 = vmatpush3.bf16.msra.mxu0 %v1307_v23 }
  0x5f   :  { %1199 = vmatprep.subr.bf16.mxu0 %v1373_v21 }
  0x60   :  { %1218 = vmatpush3.bf16.msra.mxu1 %v1315_v31 }
  0x61   :  { %1219 = vmatprep.subr.bf16.mxu1 %v1373_v21 }
  0x62   :  { %1200 = vmatpush3.bf16.msra.mxu0 %v1308_v24 }
  0x63   :  { %1201 = vmatprep.subr.bf16.mxu0 %v1373_v21 }
  0x64   :  { %1220 = vmatpush3.bf16.msra.mxu1 %v1316_v32 }
  0x65   :  { %1221 = vmatprep.subr.bf16.mxu1 %v1373_v21 }
  0x66   :  { %1202 = vmatpush3.bf16.msra.mxu0 %v1309_v25 }
  0x67   :  { %1203 = vmatprep.subr.bf16.mxu0 %v1373_v21 }
  0x68   :  { %1222 = vmatpush3.bf16.msra.mxu1 %v1317_v33 }
  0x69   :  { %1223 = vmatprep.subr.bf16.mxu1 %v1373_v21 }
  0x6a   :  { %1204 = vmatpush3.bf16.msra.mxu0 %v1310_v26 }
  0x6b   :  { %1205 = vmatprep.subr.bf16.mxu0 %v1373_v21 }
  0x6c   :  { %1224 = vmatpush3.bf16.msra.mxu1 %v1318_v34 }
  0x6d   :  { %1225 = vmatprep.subr.bf16.mxu1 %v1373_v21 }
  0x6e   :  { %1206 = vmatpush3.bf16.msra.mxu0 %v1311_v27 }
  0x6f   :  { %1207 = vmatprep.subr.bf16.mxu0 %v1373_v21 }
  0x70   :  { %1226 = vmatpush3.bf16.msra.mxu1 %v1319_v62 }
  0x71   :  { %1227 = vmatprep.subr.bf16.mxu1 %v1373_v21 }
  0x72   :  { %1208 = vmatpush3.bf16.msra.mxu0 %v1312_v28 }
  0x74   :  { %1228 = vmatpush3.bf16.msra.mxu1 %v1320_v63 }
 0x108   :  { %v1103_v35 = vpop.f32.mrb[0].mxu0 }
 0x109   :  { %v1104_v37 = vpop.f32.mrb[1].mxu0  ;;  %v1125_v38 = vpop.f32.mrb[0].mxu1 }
 0x10a   :  { %v1105_v39 = vadd.f32 %v1104_v37, %v1103_v35  ;;  %v1106_v40 = vpop.f32.mrb[2].mxu0  ;;  %v1126_v41 = vpop.f32.mrb[1].mxu1 }
 0x10b   :  { %v1107_v42 = vpop.f32.mrb[3].mxu0  ;;  %v1127_v44 = vadd.f32 %v1126_v41, %v1125_v38  ;;  %v1128_v45 = vpop.f32.mrb[2].mxu1 }
 0x10c   :  { %v641_v43 = vadd.f32 %v1105_v39, %v1004_v36  ;;  %v1129_v46 = vpop.f32.mrb[3].mxu1 }
 0x10e   :  { %v681_v47 = vadd.f32 %v1127_v44, %v641_v43 }
 0x128   :  { %v1147_v48 = vpop.f32.mrb[4].mxu0 }
 0x129   :  { %v1148_v49 = vpop.f32.mrb[5].mxu0  ;;  %v1169_v50 = vpop.f32.mrb[4].mxu1 }
 0x12a   :  { %v1149_v51 = vadd.f32 %v1148_v49, %v1147_v48  ;;  %v1150_v52 = vpop.f32.mrb[6].mxu0  ;;  %v1170_v53 = vpop.f32.mrb[5].mxu1 }
 0x12b   :  { %v1151_v54 = vpop.f32.mrb[7].mxu0  ;;  %v1171_v56 = vadd.f32 %v1170_v53, %v1169_v50  ;;  %v1172_v57 = vpop.f32.mrb[6].mxu1 }
 0x12c   :  { %v721_v55 = vadd.f32 %v1149_v51, %v681_v47  ;;  %v1173_v58 = vpop.f32.mrb[7].mxu1 }
 0x12e   :  { %v761_v59 = vadd.f32 %v1171_v56, %v721_v55 }
 0x130   :  { %v766_v60 = vmax.f32 %v761_v59, 0.0 }
 0x132   :  { %v767_v61 = vpack.c.bf16 %v766_v60, %v766_v60 }
 0x134   :  { %1210 = vmatmul.mubr.bf16.vlgmr.msra.gmra.mrb[8].mxu0 %v767_v61 }
 0x207   :  { %v871_v1 = vpop.f32.mrb[8].mxu0 }
 0x208   :  { %v872_v2 = vadd.f32 %v1069_v0, %v871_v1  ;;  %v1211_v3 = vpop.f32.mrb[9].mxu0 }
 0x209   :  { %v874_v4 = vpop.f32.mrb[10].mxu0 }
 0x20a   :  { %v877_v5 = vmax.f32 %v872_v2, 0.0  ;;  %v1212_v6 = vpop.f32.mrb[11].mxu0 }
 0x20c   :  { %v878_v7 = vpack.c.bf16 %v877_v5, %v877_v5 }
 0x20e   :  { %1230 = vmatmul.mubr.bf16.vlgmr.msra.gmra.mrb[8].mxu1 %v878_v7 }
 0x2e1   :  { %v982_v9 = vpop.f32.mrb[8].mxu1 }
 0x2e2   :  { %v983_v10 = vadd.f32 %v1078_v8, %v982_v9  ;;  %v1231_v11 = vpop.f32.mrb[9].mxu1 }
 0x2e3   :  { %v985_v12 = vpop.f32.mrb[10].mxu1 }
 0x2e4   :  { %988 = vst [vmem:[#allocation5] sm:$0x3] %v983_v10  ;;  %v1232_v13 = vpop.f32.mrb[11].mxu1 }
 0x2e5   :  { %1354 = shalt.err (!%p1351_p12)
}
 0x2e6   :  { %s1355_s2 = scalar_lea.hbm %s1466_s3, 32 }
 0x2e7   :  { %p1356_p13 = scmp.ne.s32.totalorder %s1466_s3, %s1355_s2  ;;  %p1359_p0 = scmp.lt.u32.totalorder %s1355_s2, %s1466_s3 }
 0x2e9   :  { %p1361_p1 = pnand %p1359_p0, %p1356_p13 }
 0x2eb   :  { %1364 = shalt.err (!%p1361_p1)
}
 0x2ec   :  { %998 = dma.vmem_to_hbm [thread:$0]  %s996_s6, 32, %s1466_s3, [#allocation4]  }
 0x2ed   :  { %1367 = dma.done.wait [#allocation4], 32  }
 0x2ee   :  { %1368 = vsyncadd [#allocation4], 4294967264 }
 0x2ef   :  { %1002 = vsyncpa [#allocation3], 1 }
 0x2f0   :  { %1003 = vsyncpa [#allocation4], 1 }

</bundles_post_ra>
